<compile_context>
chip_gen: v6e
topology: v6e:2x2x1
jax: 0.10.0
libtpu: 0.0.40
codegen_flags: <defaults>
</compile_context>

<pallas_src>
import functools

import jax
import jax.numpy as jnp
from jax.experimental import pallas as pl
from jax.experimental.pallas import tpu as pltpu


def _round_up(x: int, m: int) -> int:
    return ((x + m - 1) // m) * m


def _cdiv(a: int, b: int) -> int:
    return (a + b - 1) // b


def mlp_kernel(x_ref, w1_ref, b1_ref, w2_ref, b2_ref, w3_ref, b3_ref, o_ref):
    # x arrives in its native dtype; cast only at the MXU boundary.
    x = x_ref[...].astype(jnp.bfloat16)

    # Layer 1: Linear + ReLU   (dropout1 is identity at inference)
    h1 = jnp.dot(x, w1_ref[...], preferred_element_type=jnp.float32)
    h1 = jnp.maximum(h1 + b1_ref[...], 0.0)

    # Layer 2: Linear + ReLU   (dropout2 is identity at inference)
    h2 = jnp.dot(h1.astype(jnp.bfloat16), w2_ref[...],
                 preferred_element_type=jnp.float32)
    h2 = jnp.maximum(h2 + b2_ref[...], 0.0)

    # Output layer: Linear + Sigmoid (narrow, full-array-width block).
    logits = jnp.dot(h2.astype(jnp.bfloat16), w3_ref[...],
                     preferred_element_type=jnp.float32)
    z = logits + b3_ref[...]
    # sigmoid(z) = 0.5*(tanh(z/2)+1): single EUP transcendental per vreg,
    # avoids the exp + full-precision divide lowering.  f32 throughout.
    o_ref[...] = (0.5 * (jnp.tanh(0.5 * z) + 1.0)).astype(o_ref.dtype)


@functools.partial(jax.jit, static_argnames=("tile_b",))
def multilabel_dnn_forward(x, w1, b1, w2, b2, w3, b3, *, tile_b: int = 4096):
    """Fused forward pass, batch-streamed with VMEM-resident weights."""
    B, F_in = x.shape
    F, H1 = w1.shape          # expected input_size, hidden_size
    H2 = w2.shape[1]          # hidden_size // 2
    C = w3.shape[1]           # num_classes

    # Replicate the PyTorch forward's input-dimension fix-up (zero-pad / trunc).
    if F_in != F:
        new_x = jnp.zeros((B, F), dtype=x.dtype)
        m = min(F, F_in)
        x = new_x.at[:, :m].set(x[:, :m])

    # --- narrow output: pad num_classes only to the 8-sublane multiple ------
    # Out block spans the full array width (C_pad == array width), so the HBM
    # side of the write stays contiguous per tile: 32 B/row instead of the old
    # 128-wide padded f32 tile (512 B/row).
    C_pad = _round_up(C, 8)
    if C_pad != C:
        w3 = jnp.pad(w3, ((0, 0), (0, C_pad - C)))
        b3 = jnp.pad(b3, ((0, 0), (0, C_pad - C)))

    # --- batch tiling --------------------------------------------------------
    #  * tiles near tile_b so the ~0.35 us per-grid-step overhead is amortized
    #  * >= 2 grid steps whenever the batch allows, so ("parallel",) semantics
    #    can shard the batch across v7x's two TensorCores
    #  * tb derived from ceil(B/n_tiles), so padded waste is bounded by
    #    ~8*n_tiles rows rather than up to ~tb dead rows for unlucky B
    B8 = _round_up(B, 8)
    n_tiles = max(_cdiv(B8, tile_b), 2 if B8 >= 16 else 1)
    tb = _round_up(_cdiv(B8, n_tiles), 8)
    grid_n = _cdiv(B8, tb)
    B_pad = grid_n * tb
    if B_pad != B:
        # TODO(synk): a ragged last tile (grid=cdiv + masked boundary block)
        # would avoid this copy of x for batch sizes not divisible by tb.
        x = jnp.pad(x, ((0, B_pad - B), (0, 0)))

    # Weights are tiny (~25 KiB total) and VMEM-resident across the whole
    # grid; keep them bf16 for the MXU.  Biases stay f32.  x is NOT cast here
    # (the kernel casts at the dot boundary), saving an HBM round trip.
    w1_bf = w1.astype(jnp.bfloat16)
    w2_bf = w2.astype(jnp.bfloat16)
    w3_bf = w3.astype(jnp.bfloat16)
    b1_f = b1.astype(jnp.float32)
    b2_f = b2.astype(jnp.float32)
    b3_f = b3.astype(jnp.float32)

    grid = (grid_n,)

    cost = pl.CostEstimate(
        flops=2 * B_pad * (F * H1 + H1 * H2 + H2 * C_pad),
        transcendentals=B_pad * C_pad,
        bytes_accessed=(x.size * x.dtype.itemsize
                        + (w1_bf.size + w2_bf.size + w3_bf.size) * 2
                        + (b1_f.size + b2_f.size + b3_f.size) * 4
                        + B_pad * C_pad * 4),
    )

    # VMEM at tb=4096: ~7 MiB (x/out double-buffered tiles + f32 intermediates
    # + resident weights); the explicit 32 MiB limit leaves headroom for tb
    # sweeps up to ~8192 and stays well under v7x's 64 MiB physical VMEM.
    out = pl.pallas_call(
        mlp_kernel,
        out_shape=jax.ShapeDtypeStruct((B_pad, C_pad), jnp.float32),
        grid_spec=pltpu.PrefetchScalarGridSpec(
            num_scalar_prefetch=0,
            grid=grid,
            in_specs=[
                # streamed batch tile (native dtype, cast inside the kernel)
                pl.BlockSpec((tb, F), lambda i: (i, 0)),
                # VMEM-resident weights / biases (same block every iteration)
                pl.BlockSpec((F, H1), lambda i: (0, 0)),
                pl.BlockSpec((1, H1), lambda i: (0, 0)),
                pl.BlockSpec((H1, H2), lambda i: (0, 0)),
                pl.BlockSpec((1, H2), lambda i: (0, 0)),
                pl.BlockSpec((H2, C_pad), lambda i: (0, 0)),
                pl.BlockSpec((1, C_pad), lambda i: (0, 0)),
            ],
            out_specs=pl.BlockSpec((tb, C_pad), lambda i: (i, 0)),
        ),
        compiler_params=pltpu.CompilerParams(
            dimension_semantics=("parallel",),     # megacore sharding on v7x
            vmem_limit_bytes=32 * 1024 * 1024,
        ),
        cost_estimate=cost,
    )(x, w1_bf, b1_f, w2_bf, b2_f, w3_bf, b3_f)

    # Slice off batch padding and the pad classes (sigmoid(0)=0.5 there, so
    # this slice is mandatory).
    return out[:B, :C]


def init_params(key, input_size, hidden_size, num_classes):
    """Deterministic PyTorch-style init, weights stored [in, out]."""
    k1, k2, k3, k4, k5, k6 = jax.random.split(key, 6)

    def lin_init(kw, kb, fan_in, fan_out):
        bound = 1.0 / jnp.sqrt(fan_in)
        w = jax.random.uniform(kw, (fan_in, fan_out), jnp.float32, -bound, bound)
        b = jax.random.uniform(kb, (1, fan_out), jnp.float32, -bound, bound)
        return w, b

    h2 = hidden_size // 2
    w1, b1 = lin_init(k1, k2, input_size, hidden_size)
    w2, b2 = lin_init(k3, k4, hidden_size, h2)
    w3, b3 = lin_init(k5, k6, h2, num_classes)
    return w1, b1, w2, b2, w3, b3


if __name__ == "__main__":
    input_size = 32
    hidden_size = 128
    num_classes = 5
    batch = 2

    key = jax.random.PRNGKey(0)
    kx, kp = jax.random.split(key)
    x = jax.random.normal(kx, (batch, input_size), jnp.float32)
    params = init_params(kp, input_size, hidden_size, num_classes)

    out = multilabel_dnn_forward(x, *params)
    out = jax.block_until_ready(out)

    # Pure-JAX reference with the same bf16-matmul / f32-elementwise recipe.
    w1, b1, w2, b2, w3, b3 = params
    xb, w1b, w2b, w3b = (a.astype(jnp.bfloat16) for a in (x, w1, w2, w3))
    h1 = jnp.maximum(jnp.dot(xb, w1b, preferred_element_type=jnp.float32) + b1, 0.0)
    h2 = jnp.maximum(jnp.dot(h1.astype(jnp.bfloat16), w2b,
                             preferred_element_type=jnp.float32) + b2, 0.0)
    ref = jax.nn.sigmoid(jnp.dot(h2.astype(jnp.bfloat16), w3b,
                                 preferred_element_type=jnp.float32) + b3)

    assert out.shape == (batch, num_classes)
    assert jnp.allclose(out, ref, atol=2e-2, rtol=2e-2)

    print("KERNEL_OK")
</pallas_src>

<mosaic_0001>
module attributes {stable_mosaic.version = 11 : i64} {
  func.func @mlp_kernel(%arg0: i32, %arg1: memref<8x32xf32, #tpu.memory_space<vmem>>, %arg2: memref<32x128xbf16, #tpu.memory_space<vmem>>, %arg3: memref<1x128xf32, #tpu.memory_space<vmem>>, %arg4: memref<128x64xbf16, #tpu.memory_space<vmem>>, %arg5: memref<1x64xf32, #tpu.memory_space<vmem>>, %arg6: memref<64x8xbf16, #tpu.memory_space<vmem>>, %arg7: memref<1x8xf32, #tpu.memory_space<vmem>>, %arg8: memref<8x8xf32, #tpu.memory_space<vmem>>) attributes {dimension_semantics = [#tpu.dimension_semantics<parallel>], iteration_bounds = array<i64: 1>, scalar_prefetch = 0 : i64, scratch_operands = 0 : i64, tpu.core_type = #tpu.core_type<tc>, window_params = [{transform_indices = @transform_0, window_bounds = array<i64: 8, 32>}, {pipeline_mode = #tpu.pipeline_mode<synchronous>, transform_indices = @transform_1, window_bounds = array<i64: 32, 128>}, {pipeline_mode = #tpu.pipeline_mode<synchronous>, transform_indices = @transform_2, window_bounds = array<i64: 1, 128>}, {pipeline_mode = #tpu.pipeline_mode<synchronous>, transform_indices = @transform_3, window_bounds = array<i64: 128, 64>}, {pipeline_mode = #tpu.pipeline_mode<synchronous>, transform_indices = @transform_4, window_bounds = array<i64: 1, 64>}, {pipeline_mode = #tpu.pipeline_mode<synchronous>, transform_indices = @transform_5, window_bounds = array<i64: 64, 8>}, {pipeline_mode = #tpu.pipeline_mode<synchronous>, transform_indices = @transform_6, window_bounds = array<i64: 1, 8>}, {transform_indices = @transform_7, window_bounds = array<i64: 8, 8>}]} {
    %c0 = arith.constant 0 : index
    %c0_0 = arith.constant 0 : index
    %0 = vector.load %arg1[%c0, %c0_0] : memref<8x32xf32, #tpu.memory_space<vmem>>, vector<8x32xf32>
    %1 = arith.truncf %0 : vector<8x32xf32> to vector<8x32xbf16>
    %c0_1 = arith.constant 0 : index
    %c0_2 = arith.constant 0 : index
    %2 = vector.load %arg2[%c0_1, %c0_2] : memref<32x128xbf16, #tpu.memory_space<vmem>>, vector<32x128xbf16>
    %cst = arith.constant dense<0.000000e+00> : vector<8x128xf32>
    %3 = tpu.matmul %1, %2, %cst {dimension_numbers = #tpu.dot_dimension_numbers<[1], [0], [0], [1], [0, 0, 1, 1], [], []>} : vector<8x32xbf16>, vector<32x128xbf16>, vector<8x128xf32> -> vector<8x128xf32>
    %c0_3 = arith.constant 0 : index
    %c0_4 = arith.constant 0 : index
    %4 = vector.load %arg3[%c0_3, %c0_4] : memref<1x128xf32, #tpu.memory_space<vmem>>, vector<1x128xf32>
    %5 = vector.broadcast %4 : vector<1x128xf32> to vector<8x128xf32>
    %6 = arith.addf %3, %5 : vector<8x128xf32>
    %cst_5 = arith.constant 0.000000e+00 : f32
    %7 = vector.broadcast %cst_5 : f32 to vector<8x128xf32>
    %8 = arith.maximumf %6, %7 : vector<8x128xf32>
    %9 = arith.truncf %8 : vector<8x128xf32> to vector<8x128xbf16>
    %c0_6 = arith.constant 0 : index
    %c0_7 = arith.constant 0 : index
    %10 = vector.load %arg4[%c0_6, %c0_7] : memref<128x64xbf16, #tpu.memory_space<vmem>>, vector<128x64xbf16>
    %cst_8 = arith.constant dense<0.000000e+00> : vector<8x64xf32>
    %11 = tpu.matmul %9, %10, %cst_8 {dimension_numbers = #tpu.dot_dimension_numbers<[1], [0], [0], [1], [0, 0, 1, 1], [], []>} : vector<8x128xbf16>, vector<128x64xbf16>, vector<8x64xf32> -> vector<8x64xf32>
    %c0_9 = arith.constant 0 : index
    %c0_10 = arith.constant 0 : index
    %12 = vector.load %arg5[%c0_9, %c0_10] : memref<1x64xf32, #tpu.memory_space<vmem>>, vector<1x64xf32>
    %13 = vector.broadcast %12 : vector<1x64xf32> to vector<8x64xf32>
    %14 = arith.addf %11, %13 : vector<8x64xf32>
    %cst_11 = arith.constant 0.000000e+00 : f32
    %15 = vector.broadcast %cst_11 : f32 to vector<8x64xf32>
    %16 = arith.maximumf %14, %15 : vector<8x64xf32>
    %17 = arith.truncf %16 : vector<8x64xf32> to vector<8x64xbf16>
    %c0_12 = arith.constant 0 : index
    %c0_13 = arith.constant 0 : index
    %18 = vector.load %arg6[%c0_12, %c0_13] : memref<64x8xbf16, #tpu.memory_space<vmem>>, vector<64x8xbf16>
    %cst_14 = arith.constant dense<0.000000e+00> : vector<8x8xf32>
    %19 = tpu.matmul %17, %18, %cst_14 {dimension_numbers = #tpu.dot_dimension_numbers<[1], [0], [0], [1], [0, 0, 1, 1], [], []>} : vector<8x64xbf16>, vector<64x8xbf16>, vector<8x8xf32> -> vector<8x8xf32>
    %c0_15 = arith.constant 0 : index
    %c0_16 = arith.constant 0 : index
    %20 = vector.load %arg7[%c0_15, %c0_16] : memref<1x8xf32, #tpu.memory_space<vmem>>, vector<1x8xf32>
    %21 = vector.broadcast %20 : vector<1x8xf32> to vector<8x8xf32>
    %22 = arith.addf %19, %21 : vector<8x8xf32>
    %cst_17 = arith.constant 5.000000e-01 : f32
    %23 = vector.broadcast %cst_17 : f32 to vector<8x8xf32>
    %24 = arith.mulf %23, %22 : vector<8x8xf32>
    %25 = math.tanh %24 : vector<8x8xf32>
    %cst_18 = arith.constant 1.000000e+00 : f32
    %26 = vector.broadcast %cst_18 : f32 to vector<8x8xf32>
    %27 = arith.addf %25, %26 : vector<8x8xf32>
    %cst_19 = arith.constant 5.000000e-01 : f32
    %28 = vector.broadcast %cst_19 : f32 to vector<8x8xf32>
    %29 = arith.mulf %28, %27 : vector<8x8xf32>
    %c0_20 = arith.constant 0 : index
    %c0_21 = arith.constant 0 : index
    %30 = vector.load %arg8[%c0_20, %c0_21] : memref<8x8xf32, #tpu.memory_space<vmem>>, vector<8x8xf32>
    tpu.vector_store %arg8[%c0_20, %c0_21], %29 {strides = array<i32>} : memref<8x8xf32, #tpu.memory_space<vmem>>, vector<8x8xf32>,
    return
  }
  func.func @transform_0(%arg0: i32) -> (i32, i32) {
    %c0_i32 = arith.constant 0 : i32
    %c0_i32_0 = arith.constant 0 : i32
    return %arg0, %c0_i32 : i32, i32
  }
  func.func @transform_1(%arg0: i32) -> (i32, i32) {
    %c0_i32 = arith.constant 0 : i32
    %c0_i32_0 = arith.constant 0 : i32
    %c0_i32_1 = arith.constant 0 : i32
    return %c0_i32, %c0_i32_0 : i32, i32
  }
  func.func @transform_2(%arg0: i32) -> (i32, i32) {
    %c0_i32 = arith.constant 0 : i32
    %c0_i32_0 = arith.constant 0 : i32
    %c0_i32_1 = arith.constant 0 : i32
    return %c0_i32, %c0_i32_0 : i32, i32
  }
  func.func @transform_3(%arg0: i32) -> (i32, i32) {
    %c0_i32 = arith.constant 0 : i32
    %c0_i32_0 = arith.constant 0 : i32
    %c0_i32_1 = arith.constant 0 : i32
    return %c0_i32, %c0_i32_0 : i32, i32
  }
  func.func @transform_4(%arg0: i32) -> (i32, i32) {
    %c0_i32 = arith.constant 0 : i32
    %c0_i32_0 = arith.constant 0 : i32
    %c0_i32_1 = arith.constant 0 : i32
    return %c0_i32, %c0_i32_0 : i32, i32
  }
  func.func @transform_5(%arg0: i32) -> (i32, i32) {
    %c0_i32 = arith.constant 0 : i32
    %c0_i32_0 = arith.constant 0 : i32
    %c0_i32_1 = arith.constant 0 : i32
    return %c0_i32, %c0_i32_0 : i32, i32
  }
  func.func @transform_6(%arg0: i32) -> (i32, i32) {
    %c0_i32 = arith.constant 0 : i32
    %c0_i32_0 = arith.constant 0 : i32
    %c0_i32_1 = arith.constant 0 : i32
    return %c0_i32, %c0_i32_0 : i32, i32
  }
  func.func @transform_7(%arg0: i32) -> (i32, i32) {
    %c0_i32 = arith.constant 0 : i32
    %c0_i32_0 = arith.constant 0 : i32
    return %arg0, %c0_i32 : i32, i32
  }
}

</mosaic_0001>

<bundles_post_ra>
// kernel: multilabel_dnn_forward.1
= control target key start
LH: loop header
LB: loop body
LE: loop exit
PB: predicated region body
PF: predicated region fallthrough
CT: control target
= control target key end

     0   :  { %v398_v0 = vmov 0.0   ;;  %vm399_vm0 = vmmov 0   ;;  %vm52_vm1 = vcmask 261120   ;;  %vm250_vm2 = vcmask 523264   ;;  %s500_s1 = inlined_call_operand.vmem [shape: bf16[32,128], index: 1, kind: input, shape index: {}]   ;;  %s501_s0 = inlined_call_operand.vmem [shape: f32[8,32], index: 0, kind: input, shape index: {}]   ;;  %s502_s3 = inlined_call_operand.vmem [shape: bf16[128,64], index: 3, kind: input, shape index: {}]   ;;  %s503_s5 = inlined_call_operand.vmem [shape: bf16[64,8], index: 5, kind: input, shape index: {}]   ;;  %s504_s2 = inlined_call_operand.vmem [shape: f32[1,128], index: 2, kind: input, shape index: {}]   ;;  %s505_s4 = inlined_call_operand.vmem [shape: f32[1,64], index: 4, kind: input, shape index: {}]   ;;  %s506_s6 = inlined_call_operand.vmem [shape: f32[1,8], index: 6, kind: input, shape index: {}]   ;;  %s507_s7 = inlined_call_operand.vmem [shape: f32[8,8], index: 7, kind: output, shape index: {}]  }
   0x1   :  { %340 = vmatprep.subr.bf16.mxu0 %v398_v0  ;;  %v382_v1 = vld [vmem:[%s500_s1 + $0x8] sm:$0xff]   ;;  %344 = vmatprep.mubr.msk.bf16.mxu0 %vm399_vm0, %v398_v0  ;;  %v383_v2 = vld [vmem:[%s500_s1] sm:$0xff]   ;;  %v384_v4 = vld [vmem:[%s502_s3 + $0x38] sm:$0xff]   ;;  %vm298_vm3 = vcmask 64512  }
   0x2   :  { %348 = vmatprep.subr.bf16.mxu1 %v398_v0  ;;  %364 = vmatprep.mubr.msk.bf16.mxu1 %vm399_vm0, %v398_v0  ;;  %v27_v3 = vld [vmem:[%s501_s0] sm:$0xff]  ;;  %v385_v6 = vld [vmem:[%s502_s3 + $0x30] sm:$0xff]   ;;  %v386_v7 = vld [vmem:[%s502_s3 + $0x28] sm:$0xff]  }
   0x3   :  { %341 = vmatpush3.bf16.msra.mxu0 %v382_v1  ;;  %v28_v5 = vpack.c.bf16 %v27_v3, %v27_v3  ;;  %349 = vmatpush3.bf16.msra.mxu1 %v384_v4  ;;  %v387_v8 = vld [vmem:[%s502_s3 + $0x20] sm:$0xff]   ;;  %v388_v9 = vld [vmem:[%s502_s3 + $0x18] sm:$0xff]   ;;  %v389_v10 = vld [vmem:[%s502_s3 + $0x10] sm:$0xff]  }
   0x4   :  { %342 = vmatprep.subr.bf16.mxu0 %v398_v0  ;;  %350 = vmatprep.subr.bf16.mxu1 %v398_v0  ;;  %v390_v11 = vld [vmem:[%s502_s3 + $0x8] sm:$0xff]   ;;  %v391_v12 = vld [vmem:[%s502_s3] sm:$0xff]   ;;  %v392_v13 = vld [vmem:[%s503_s5 + $0x18] sm:$0xff]  }
   0x5   :  { %v393_v14 = vld [vmem:[%s503_s5 + $0x10] sm:$0xff]   ;;  %v304_v15 = vld [vmem:[%s504_s2] ss:$0 sm:$0xff]  ;;  %v394_v23 = vld [vmem:[%s503_s5 + $0x8] sm:$0xff]  }
   0x6   :  { %v395_v24 = vld [vmem:[%s503_s5] sm:$0xff]  }
   0x7   :  { %343 = vmatpush3.bf16.msra.mxu0 %v383_v2  ;;  %351 = vmatpush3.bf16.msra.mxu1 %v385_v6  ;;  %v308_v25 = vld [vmem:[%s505_s4] ss:$0 sm:$0xff] }
   0x8   :  { %368 = vmatprep.subr.bf16.mxu0 %v398_v0  ;;  %352 = vmatprep.subr.bf16.mxu1 %v398_v0  ;;  %v317_v33 = vld [vmem:[%s506_s6] ss:$0 sm:$0xff] }
   0xa   :  { %345 = vmatmul.mubr.msk.bf16.vlgmr.msra.gmra.mxu0 %vm52_vm1, %v28_v5 }
   0xb   :  { %376 = vmatprep.mubr.msk.bf16.mxu0 %vm399_vm0, %v398_v0  ;;  %353 = vmatpush3.bf16.msra.mxu1 %v386_v7 }
   0xc   :  { %354 = vmatprep.subr.bf16.mxu1 %v398_v0  ;;  %369 = vmatpush3.bf16.msra.mxu0 %v392_v13 }
   0xd   :  { %370 = vmatprep.subr.bf16.mxu0 %v398_v0 }
   0xf   :  { %355 = vmatpush3.bf16.msra.mxu1 %v387_v8 }
  0x10   :  { %356 = vmatprep.subr.bf16.mxu1 %v398_v0  ;;  %371 = vmatpush3.bf16.msra.mxu0 %v393_v14 }
  0x11   :  { %372 = vmatprep.subr.bf16.mxu0 %v398_v0 }
  0x13   :  { %357 = vmatpush3.bf16.msra.mxu1 %v388_v9 }
  0x14   :  { %358 = vmatprep.subr.bf16.mxu1 %v398_v0  ;;  %373 = vmatpush3.bf16.msra.mxu0 %v394_v23 }
  0x15   :  { %374 = vmatprep.subr.bf16.mxu0 %v398_v0 }
  0x17   :  { %359 = vmatpush3.bf16.msra.mxu1 %v389_v10 }
  0x18   :  { %360 = vmatprep.subr.bf16.mxu1 %v398_v0  ;;  %375 = vmatpush3.bf16.msra.mxu0 %v395_v24 }
  0x1b   :  { %361 = vmatpush3.bf16.msra.mxu1 %v390_v11 }
  0x1c   :  { %362 = vmatprep.subr.bf16.mxu1 %v398_v0 }
  0x1f   :  { %363 = vmatpush3.bf16.msra.mxu1 %v391_v12 }
  0xca   :  { %v90_v16 = vpop.f32.mrf.mxu0 }
  0xcb   :  { %v91_v17 = vadd.f32 %v304_v15, %v90_v16 }
  0xcc   :  { %v346_v18 = vpop.f32.mrf.mxu0 }
  0xcd   :  { %v96_v19 = vmax.f32 %v91_v17, 0.0 }
  0xce   :  { %v93_v20 = vpop.f32.mrf.mxu0 }
  0xcf   :  { %v97_v21 = vpack.c.bf16 %v96_v19, %v96_v19 }
  0xd0   :  { %v347_v22 = vpop.f32.mrf.mxu0 }
  0xd1   :  { %365 = vmatmul.mubr.bf16.vlgmr.msra.gmra.mxu1 %v97_v21 }
 0x191   :  { %v203_v26 = vpop.f32.mrf.mxu1 }
 0x192   :  { %v204_v27 = vadd.f32 %v308_v25, %v203_v26 }
 0x193   :  { %v366_v28 = vpop.f32.mrf.mxu1 }
 0x194   :  { %v209_v29 = vmax.f32 %v204_v27, 0.0 }
 0x195   :  { %v206_v30 = vpop.f32.mrf.mxu1 }
 0x196   :  { %v210_v31 = vpack.c.bf16 %v209_v29, %v209_v29 }
 0x197   :  { %v367_v32 = vpop.f32.mrf.mxu1 }
 0x198   :  { %377 = vmatmul.mubr.msk.bf16.vlgmr.msra.gmra.mxu0 %vm250_vm2, %v210_v31 }
 0x258   :  { %v288_v34 = vpop.f32.mrf.mxu0 }
 0x259   :  { %v289_v35 = vadd.f32 %v317_v33, %v288_v34 }
 0x25a   :  { %v378_v36 = vpop.f32.mrf.mxu0 }
 0x25b   :  { %v294_v37 = vmul.f32 0.5, %v289_v35 }
 0x25c   :  { %v291_v38 = vpop.f32.mrf.mxu0 }
 0x25d   :  { %396 = vtanh.f32 %v294_v37 }
 0x25e   :  { %v379_v39 = vpop.f32.mrf.mxu0 }
 0x26a   :  { %v397_v40 = vpop.eup %396 }
 0x26b   :  { %v296_v41 = vadd.f32 1.0, %v397_v40 }
 0x26d   :  { %v297_v42 = vmul.f32 0.5, %v296_v41 }
 0x26f   :  { %299 = vst.msk [vmem:[%s507_s7] sm:$0xff] %vm298_vm3, %v297_v42 }

</bundles_post_ra>
